<compile_context>
chip_gen: v5e
topology: v5e:2x2
jax: 0.10.0
libtpu: 0.0.40
codegen_flags: <defaults>
</compile_context>

<pallas_src>
import jax
import jax.numpy as jnp
from jax import lax
from jax.experimental import pallas as pl
from jax.experimental.pallas import tpu as pltpu

_VMEM = pl.BlockSpec(memory_space=pltpu.MemorySpace.VMEM)
_SMEM = pl.BlockSpec(memory_space=pltpu.MemorySpace.SMEM)


# ----------------------------------------------------------------------------
# in-kernel gather / scatter helpers (index-based, O(E*H))
# ----------------------------------------------------------------------------
def _gather_rows(out_sref, idx_ref, table_ref, n):
    """out[e, :] = table[idx[e], :] for e in [0, n)."""
    def body(e, c):
        out_sref[pl.ds(e, 1), :] = table_ref[pl.ds(idx_ref[e], 1), :]
        return c
    lax.fori_loop(0, n, body, 0)


def _scatter_add_rows(acc_sref, idx_ref, msg_sref, n):
    """acc[:] = 0 ; acc[idx[e], :] += msg[e, :] for e in [0, n) (sequential)."""
    acc_sref[...] = jnp.zeros_like(acc_sref)

    def body(e, c):
        d = idx_ref[e]
        acc_sref[pl.ds(d, 1), :] = acc_sref[pl.ds(d, 1), :] + msg_sref[pl.ds(e, 1), :]
        return c
    lax.fori_loop(0, n, body, 0)


# ----------------------------------------------------------------------------
# Kernel A: fused  get_emb (2 GIN-E layers, no attention)  +  edge-MLP  + sigmoid
#   att_out[e] = sigmoid( MLP( cat[h2[src_e], h2[dst_e]] ) )
# ----------------------------------------------------------------------------
def _gnn_edge_pass_kernel(src_ref, dst_ref,                       # SMEM int32 [E]
                          x_ref, ea_ref,                          # [N,FP], [E,FP]
                          we1_ref, w1_ref, b1_ref,
                          we2_ref, w2_ref, b2_ref,
                          w1s_ref, w1d_ref, b1m_ref, w2m_ref, b2m_ref,
                          att_ref,                                # out [E,1]
                          msg1, acc1, h1, msg2, acc2, h2, gdst):  # VMEM scratch
    E = ea_ref.shape[0]

    # ---- GIN-E layer 1 (attention = 1 in get_emb) ----
    _gather_rows(msg1, src_ref, x_ref, E)
    msg1[...] = msg1[...] + jnp.dot(ea_ref[...], we1_ref[...],
                                    preferred_element_type=jnp.float32)
    _scatter_add_rows(acc1, dst_ref, msg1, E)
    h1[...] = jnp.maximum(
        jnp.dot(x_ref[...] + acc1[...], w1_ref[...],
                preferred_element_type=jnp.float32) + b1_ref[...], 0.0)

    # ---- GIN-E layer 2 ----
    _gather_rows(msg2, src_ref, h1, E)
    msg2[...] = msg2[...] + jnp.dot(ea_ref[...], we2_ref[...],
                                    preferred_element_type=jnp.float32)
    _scatter_add_rows(acc2, dst_ref, msg2, E)
    h2[...] = jnp.maximum(
        jnp.dot(h1[...] + acc2[...], w2_ref[...],
                preferred_element_type=jnp.float32) + b2_ref[...], 0.0)

    # ---- edge MLP over cat(h2[src], h2[dst]) + sigmoid (stays in VMEM) ----
    _gather_rows(msg2, src_ref, h2, E)    # reuse msg2 as h2[src]
    _gather_rows(gdst, dst_ref, h2, E)
    hid = jnp.maximum(
        jnp.dot(msg2[...], w1s_ref[...], preferred_element_type=jnp.float32)
        + jnp.dot(gdst[...], w1d_ref[...], preferred_element_type=jnp.float32)
        + b1m_ref[...], 0.0)
    logits = jnp.dot(hid, w2m_ref[...], preferred_element_type=jnp.float32) + b2m_ref[...]
    att_ref[...] = jax.nn.sigmoid(logits)


def gnn_edge_pass(src, dst, x, edge_attr, gp, ap):
    N, FP = x.shape
    E = edge_attr.shape[0]
    H = gp["W1"].shape[1]
    return pl.pallas_call(
        _gnn_edge_pass_kernel,
        out_shape=jax.ShapeDtypeStruct((E, 1), jnp.float32),
        in_specs=[_SMEM, _SMEM] + [_VMEM] * 13,
        out_specs=_VMEM,
        scratch_shapes=[
            pltpu.VMEM((E, FP), jnp.float32),   # msg1
            pltpu.VMEM((N, FP), jnp.float32),   # acc1
            pltpu.VMEM((N, H), jnp.float32),    # h1
            pltpu.VMEM((E, H), jnp.float32),    # msg2
            pltpu.VMEM((N, H), jnp.float32),    # acc2
            pltpu.VMEM((N, H), jnp.float32),    # h2
            pltpu.VMEM((E, H), jnp.float32),    # gdst
        ],
    )(src, dst, x, edge_attr,
      gp["We1"], gp["W1"], gp["b1"], gp["We2"], gp["W2"], gp["b2"],
      ap["w1s"], ap["w1d"], ap["b1"], ap["w2"], ap["b2"])


# ----------------------------------------------------------------------------
# Kernel B: fused classification pass of gnn_varphi_2 with edge attention
#   edge_M = M * edge_emb  (detach is a no-op for forward values)
#   2 attended GIN-E layers  ->  per-graph mean pool  ->  linear head
# ----------------------------------------------------------------------------
def _classify_pass_kernel(src_ref, dst_ref, batch_ref,            # SMEM int32
                          m_ref, emb_ref,                         # [E,1], [E,1]
                          x_ref, ea_ref,                          # [N,FP], [E,FP]
                          we1_ref, w1_ref, b1_ref,
                          we2_ref, w2_ref, b2_ref,
                          wc_ref, bc_ref, invc_ref,               # invc [B,1]
                          out_ref,                                # out [B,C]
                          msg1, acc1, h1, msg2, acc2, h2, pooled):
    E = ea_ref.shape[0]
    N = x_ref.shape[0]

    att = m_ref[...] * emb_ref[...]                               # edge_M, [E,1]

    # ---- GIN-E layer 1 (attended) ----
    _gather_rows(msg1, src_ref, x_ref, E)
    msg1[...] = (msg1[...] + jnp.dot(ea_ref[...], we1_ref[...],
                                     preferred_element_type=jnp.float32)) * att
    _scatter_add_rows(acc1, dst_ref, msg1, E)
    h1[...] = jnp.maximum(
        jnp.dot(x_ref[...] + acc1[...], w1_ref[...],
                preferred_element_type=jnp.float32) + b1_ref[...], 0.0)

    # ---- GIN-E layer 2 (attended) ----
    _gather_rows(msg2, src_ref, h1, E)
    msg2[...] = (msg2[...] + jnp.dot(ea_ref[...], we2_ref[...],
                                     preferred_element_type=jnp.float32)) * att
    _scatter_add_rows(acc2, dst_ref, msg2, E)
    h2[...] = jnp.maximum(
        jnp.dot(h1[...] + acc2[...], w2_ref[...],
                preferred_element_type=jnp.float32) + b2_ref[...], 0.0)

    # ---- per-graph mean pool (index-based scatter-add over nodes) ----
    pooled[...] = jnp.zeros_like(pooled)

    def pool_body(n, c):
        g = batch_ref[n]
        pooled[pl.ds(g, 1), :] = pooled[pl.ds(g, 1), :] + h2[pl.ds(n, 1), :]
        return c
    lax.fori_loop(0, N, pool_body, 0)

    out_ref[...] = (jnp.dot(pooled[...] * invc_ref[...], wc_ref[...],
                            preferred_element_type=jnp.float32) + bc_ref[...])


def classify_pass(src, dst, batch, M, emb, x, edge_attr, gp, inv_counts):
    N, FP = x.shape
    E = edge_attr.shape[0]
    H = gp["W1"].shape[1]
    B = inv_counts.shape[0]
    C = gp["Wc"].shape[1]
    return pl.pallas_call(
        _classify_pass_kernel,
        out_shape=jax.ShapeDtypeStruct((B, C), jnp.float32),
        in_specs=[_SMEM, _SMEM, _SMEM] + [_VMEM] * 13,
        out_specs=_VMEM,
        scratch_shapes=[
            pltpu.VMEM((E, FP), jnp.float32),   # msg1
            pltpu.VMEM((N, FP), jnp.float32),   # acc1
            pltpu.VMEM((N, H), jnp.float32),    # h1
            pltpu.VMEM((E, H), jnp.float32),    # msg2
            pltpu.VMEM((N, H), jnp.float32),    # acc2
            pltpu.VMEM((N, H), jnp.float32),    # h2
            pltpu.VMEM((B, H), jnp.float32),    # pooled
        ],
    )(src, dst, batch, M, emb, x, edge_attr,
      gp["We1"], gp["W1"], gp["b1"], gp["We2"], gp["W2"], gp["b2"],
      gp["Wc"], gp["bc"], inv_counts)


# ----------------------------------------------------------------------------
# readout_graph_2 forward (eval path, training=False)
# ----------------------------------------------------------------------------
def readout_graph_2_forward(params, x, edge_attr, src, dst, batch, inv_counts,
                            epoch=0, training=False):
    # M        = sigmoid( agg1( varphi1.get_emb(x, ...) ) )
    M = gnn_edge_pass(src, dst, x, edge_attr, params["varphi1"], params["agg1"])
    # edge_emb = sigmoid( agg2( varphi2.get_emb(x, ...) ) )   (eval: no Gumbel noise)
    edge_emb = gnn_edge_pass(src, dst, x, edge_attr, params["varphi2"], params["agg2"])
    # clf_logits_M = varphi2(x, ..., edge_atten = M * edge_emb.detach())
    clf_logits_M = classify_pass(src, dst, batch, M, edge_emb, x, edge_attr,
                                 params["varphi2"], inv_counts)
    # NOTE: the reference eval branch also computes clf_logits_M_delta from a
    # fresh uniform noise draw but never uses it in the returned values; that
    # dead work (noise + edge_M_delta + a full extra GNN pass) is elided here.
    loss = 0.0
    return edge_emb, clf_logits_M, loss


# ----------------------------------------------------------------------------
# Deterministic setup + smoke test
# ----------------------------------------------------------------------------
def _init_params(key, F, De, H, Hm, C, FP):
    def norm(k, shape, scale=0.1):
        return scale * jax.random.normal(k, shape, jnp.float32)

    def pad2(a, shape):
        out = jnp.zeros(shape, jnp.float32)
        return out.at[:a.shape[0], :a.shape[1]].set(a)

    keys = iter(jax.random.split(key, 32))

    def gnn_params():
        # logical shapes: We1 (De,F), W1 (F,H), We2 (De,H); zero-padded to FP
        return dict(
            We1=pad2(norm(next(keys), (De, F)), (FP, FP)),
            W1=pad2(norm(next(keys), (F, H)), (FP, H)),
            b1=jnp.zeros((1, H), jnp.float32),
            We2=pad2(norm(next(keys), (De, H)), (FP, H)),
            W2=norm(next(keys), (H, H)),
            b2=jnp.zeros((1, H), jnp.float32),
            Wc=norm(next(keys), (H, C)),
            bc=jnp.zeros((1, C), jnp.float32),
        )

    def agg_params():
        return dict(
            w1s=norm(next(keys), (H, Hm)), w1d=norm(next(keys), (H, Hm)),
            b1=jnp.zeros((1, Hm), jnp.float32),
            w2=norm(next(keys), (Hm, 1)), b2=jnp.zeros((1, 1), jnp.float32),
        )

    return dict(varphi1=gnn_params(), agg1=agg_params(),
                varphi2=gnn_params(), agg2=agg_params())


if __name__ == "__main__":
    # small graph batch: B graphs, ring topology, deterministic
    B, nodes_per_graph = 2, 8
    N = B * nodes_per_graph
    F, De, C = 4, 3, 3
    H, Hm = 128, 128          # lane-aligned hidden dims (MXU utilization)
    FP = 128                  # zero-padded feature / edge-attr lane width

    src_list, dst_list, batch_list = [], [], []
    for g in range(B):
        off = g * nodes_per_graph
        for i in range(nodes_per_graph):
            j = (i + 1) % nodes_per_graph
            src_list += [off + i, off + j]
            dst_list += [off + j, off + i]
        batch_list += [g] * nodes_per_graph
    src = jnp.asarray(src_list, jnp.int32)
    dst = jnp.asarray(dst_list, jnp.int32)
    batch = jnp.asarray(batch_list, jnp.int32)
    E = int(src.shape[0])

    inv_counts = jnp.full((B, 1), 1.0 / nodes_per_graph, jnp.float32)

    k0 = jax.random.PRNGKey(0)
    kx, ke, kp = jax.random.split(k0, 3)
    x_raw = jax.random.normal(kx, (N, F), jnp.float32)
    ea_raw = jax.random.normal(ke, (E, De), jnp.float32)
    # zero-pad feature dims to 128 lanes (numerically exact)
    x = jnp.zeros((N, FP), jnp.float32).at[:, :F].set(x_raw)
    edge_attr = jnp.zeros((E, FP), jnp.float32).at[:, :De].set(ea_raw)

    params = _init_params(kp, F, De, H, Hm, C, FP)

    edge_emb, clf_logits_M, loss = readout_graph_2_forward(
        params, x, edge_attr, src, dst, batch, inv_counts,
        epoch=0, training=False)

    jax.block_until_ready((edge_emb, clf_logits_M))
    assert edge_emb.shape == (E, 1)
    assert clf_logits_M.shape == (B, C)
    assert bool(jnp.all(jnp.isfinite(edge_emb))) and bool(jnp.all(jnp.isfinite(clf_logits_M)))
    print("KERNEL_OK")
</pallas_src>

<mosaic_0001>
module attributes {stable_mosaic.version = 11 : i64} {
  func.func @_gnn_edge_pass_kernel(%arg0: memref<32xi32, #tpu.memory_space<smem>>, %arg1: memref<32xi32, #tpu.memory_space<smem>>, %arg2: memref<16x128xf32, #tpu.memory_space<vmem>>, %arg3: memref<32x128xf32, #tpu.memory_space<vmem>>, %arg4: memref<128x128xf32, #tpu.memory_space<vmem>>, %arg5: memref<128x128xf32, #tpu.memory_space<vmem>>, %arg6: memref<1x128xf32, #tpu.memory_space<vmem>>, %arg7: memref<128x128xf32, #tpu.memory_space<vmem>>, %arg8: memref<128x128xf32, #tpu.memory_space<vmem>>, %arg9: memref<1x128xf32, #tpu.memory_space<vmem>>, %arg10: memref<128x128xf32, #tpu.memory_space<vmem>>, %arg11: memref<128x128xf32, #tpu.memory_space<vmem>>, %arg12: memref<1x128xf32, #tpu.memory_space<vmem>>, %arg13: memref<128x1xf32, #tpu.memory_space<vmem>>, %arg14: memref<1x1xf32, #tpu.memory_space<vmem>>, %arg15: memref<32x1xf32, #tpu.memory_space<vmem>>, %arg16: memref<32x128xf32, #tpu.memory_space<vmem>>, %arg17: memref<16x128xf32, #tpu.memory_space<vmem>>, %arg18: memref<16x128xf32, #tpu.memory_space<vmem>>, %arg19: memref<32x128xf32, #tpu.memory_space<vmem>>, %arg20: memref<16x128xf32, #tpu.memory_space<vmem>>, %arg21: memref<16x128xf32, #tpu.memory_space<vmem>>, %arg22: memref<32x128xf32, #tpu.memory_space<vmem>>) attributes {dimension_semantics = [], scalar_prefetch = 0 : i64, scratch_operands = 7 : i64, tpu.core_type = #tpu.core_type<tc>} {
    %c0_i32 = arith.constant 0 : i32
    %c32_i32 = arith.constant 32 : i32
    %0 = arith.addi %c0_i32, %c32_i32 : i32
    %c1_i32 = arith.constant 1 : i32
    scf.for %arg23 = %c0_i32 to %0 step %c1_i32  : i32 {
      %67 = arith.index_cast %arg23 : i32 to index
      %68 = memref.load %arg0[%67] : memref<32xi32, #tpu.memory_space<smem>>
      %69 = arith.index_cast %68 : i32 to index
      %c0_88 = arith.constant 0 : index
      %70 = vector.load %arg2[%69, %c0_88] : memref<16x128xf32, #tpu.memory_space<vmem>>, vector<1x128xf32>
      %71 = arith.index_cast %arg23 : i32 to index
      %c0_89 = arith.constant 0 : index
      %72 = vector.load %arg16[%71, %c0_89] : memref<32x128xf32, #tpu.memory_space<vmem>>, vector<1x128xf32>
      tpu.vector_store %arg16[%71, %c0_89], %70 {strides = array<i32>} : memref<32x128xf32, #tpu.memory_space<vmem>>, vector<1x128xf32>,
    }
    %c32_i32_0 = arith.constant 32 : i32
    %c0 = arith.constant 0 : index
    %c0_1 = arith.constant 0 : index
    %1 = vector.load %arg16[%c0, %c0_1] : memref<32x128xf32, #tpu.memory_space<vmem>>, vector<32x128xf32>
    %c0_2 = arith.constant 0 : index
    %c0_3 = arith.constant 0 : index
    %2 = vector.load %arg3[%c0_2, %c0_3] : memref<32x128xf32, #tpu.memory_space<vmem>>, vector<32x128xf32>
    %c0_4 = arith.constant 0 : index
    %c0_5 = arith.constant 0 : index
    %3 = vector.load %arg4[%c0_4, %c0_5] : memref<128x128xf32, #tpu.memory_space<vmem>>, vector<128x128xf32>
    %cst = arith.constant dense<0.000000e+00> : vector<32x128xf32>
    %4 = tpu.matmul %2, %3, %cst {dimension_numbers = #tpu.dot_dimension_numbers<[1], [0], [0], [1], [0, 0, 1, 1], [], []>} : vector<32x128xf32>, vector<128x128xf32>, vector<32x128xf32> -> vector<32x128xf32>
    %5 = arith.addf %1, %4 : vector<32x128xf32>
    %c0_6 = arith.constant 0 : index
    %c0_7 = arith.constant 0 : index
    %6 = vector.load %arg16[%c0_6, %c0_7] : memref<32x128xf32, #tpu.memory_space<vmem>>, vector<32x128xf32>
    tpu.vector_store %arg16[%c0_6, %c0_7], %5 {strides = array<i32>} : memref<32x128xf32, #tpu.memory_space<vmem>>, vector<32x128xf32>,
    %cst_8 = arith.constant 0.000000e+00 : f32
    %7 = vector.broadcast %cst_8 : f32 to vector<16x128xf32>
    %c0_9 = arith.constant 0 : index
    %c0_10 = arith.constant 0 : index
    %8 = vector.load %arg17[%c0_9, %c0_10] : memref<16x128xf32, #tpu.memory_space<vmem>>, vector<16x128xf32>
    tpu.vector_store %arg17[%c0_9, %c0_10], %7 {strides = array<i32>} : memref<16x128xf32, #tpu.memory_space<vmem>>, vector<16x128xf32>,
    %c0_i32_11 = arith.constant 0 : i32
    %c32_i32_12 = arith.constant 32 : i32
    %9 = arith.addi %c0_i32_11, %c32_i32_12 : i32
    %c1_i32_13 = arith.constant 1 : i32
    scf.for %arg23 = %c0_i32_11 to %9 step %c1_i32_13  : i32 {
      %67 = arith.index_cast %arg23 : i32 to index
      %68 = memref.load %arg1[%67] : memref<32xi32, #tpu.memory_space<smem>>
      %69 = arith.index_cast %68 : i32 to index
      %c0_88 = arith.constant 0 : index
      %70 = vector.load %arg17[%69, %c0_88] : memref<16x128xf32, #tpu.memory_space<vmem>>, vector<1x128xf32>
      %71 = arith.index_cast %arg23 : i32 to index
      %c0_89 = arith.constant 0 : index
      %72 = vector.load %arg16[%71, %c0_89] : memref<32x128xf32, #tpu.memory_space<vmem>>, vector<1x128xf32>
      %73 = arith.addf %70, %72 : vector<1x128xf32>
      %74 = arith.index_cast %68 : i32 to index
      %c0_90 = arith.constant 0 : index
      %75 = vector.load %arg17[%74, %c0_90] : memref<16x128xf32, #tpu.memory_space<vmem>>, vector<1x128xf32>
      tpu.vector_store %arg17[%74, %c0_90], %73 {strides = array<i32>} : memref<16x128xf32, #tpu.memory_space<vmem>>, vector<1x128xf32>,
    }
    %c32_i32_14 = arith.constant 32 : i32
    %c0_15 = arith.constant 0 : index
    %c0_16 = arith.constant 0 : index
    %10 = vector.load %arg2[%c0_15, %c0_16] : memref<16x128xf32, #tpu.memory_space<vmem>>, vector<16x128xf32>
    %c0_17 = arith.constant 0 : index
    %c0_18 = arith.constant 0 : index
    %11 = vector.load %arg17[%c0_17, %c0_18] : memref<16x128xf32, #tpu.memory_space<vmem>>, vector<16x128xf32>
    %12 = arith.addf %10, %11 : vector<16x128xf32>
    %c0_19 = arith.constant 0 : index
    %c0_20 = arith.constant 0 : index
    %13 = vector.load %arg5[%c0_19, %c0_20] : memref<128x128xf32, #tpu.memory_space<vmem>>, vector<128x128xf32>
    %cst_21 = arith.constant dense<0.000000e+00> : vector<16x128xf32>
    %14 = tpu.matmul %12, %13, %cst_21 {dimension_numbers = #tpu.dot_dimension_numbers<[1], [0], [0], [1], [0, 0, 1, 1], [], []>} : vector<16x128xf32>, vector<128x128xf32>, vector<16x128xf32> -> vector<16x128xf32>
    %c0_22 = arith.constant 0 : index
    %c0_23 = arith.constant 0 : index
    %15 = vector.load %arg6[%c0_22, %c0_23] : memref<1x128xf32, #tpu.memory_space<vmem>>, vector<1x128xf32>
    %16 = vector.broadcast %15 : vector<1x128xf32> to vector<16x128xf32>
    %17 = arith.addf %14, %16 : vector<16x128xf32>
    %cst_24 = arith.constant 0.000000e+00 : f32
    %18 = vector.broadcast %cst_24 : f32 to vector<16x128xf32>
    %19 = arith.maximumf %17, %18 : vector<16x128xf32>
    %c0_25 = arith.constant 0 : index
    %c0_26 = arith.constant 0 : index
    %20 = vector.load %arg18[%c0_25, %c0_26] : memref<16x128xf32, #tpu.memory_space<vmem>>, vector<16x128xf32>
    tpu.vector_store %arg18[%c0_25, %c0_26], %19 {strides = array<i32>} : memref<16x128xf32, #tpu.memory_space<vmem>>, vector<16x128xf32>,
    %c0_i32_27 = arith.constant 0 : i32
    %c32_i32_28 = arith.constant 32 : i32
    %21 = arith.addi %c0_i32_27, %c32_i32_28 : i32
    %c1_i32_29 = arith.constant 1 : i32
    scf.for %arg23 = %c0_i32_27 to %21 step %c1_i32_29  : i32 {
      %67 = arith.index_cast %arg23 : i32 to index
      %68 = memref.load %arg0[%67] : memref<32xi32, #tpu.memory_space<smem>>
      %69 = arith.index_cast %68 : i32 to index
      %c0_88 = arith.constant 0 : index
      %70 = vector.load %arg18[%69, %c0_88] : memref<16x128xf32, #tpu.memory_space<vmem>>, vector<1x128xf32>
      %71 = arith.index_cast %arg23 : i32 to index
      %c0_89 = arith.constant 0 : index
      %72 = vector.load %arg19[%71, %c0_89] : memref<32x128xf32, #tpu.memory_space<vmem>>, vector<1x128xf32>
      tpu.vector_store %arg19[%71, %c0_89], %70 {strides = array<i32>} : memref<32x128xf32, #tpu.memory_space<vmem>>, vector<1x128xf32>,
    }
    %c32_i32_30 = arith.constant 32 : i32
    %c0_31 = arith.constant 0 : index
    %c0_32 = arith.constant 0 : index
    %22 = vector.load %arg19[%c0_31, %c0_32] : memref<32x128xf32, #tpu.memory_space<vmem>>, vector<32x128xf32>
    %c0_33 = arith.constant 0 : index
    %c0_34 = arith.constant 0 : index
    %23 = vector.load %arg3[%c0_33, %c0_34] : memref<32x128xf32, #tpu.memory_space<vmem>>, vector<32x128xf32>
    %c0_35 = arith.constant 0 : index
    %c0_36 = arith.constant 0 : index
    %24 = vector.load %arg7[%c0_35, %c0_36] : memref<128x128xf32, #tpu.memory_space<vmem>>, vector<128x128xf32>
    %cst_37 = arith.constant dense<0.000000e+00> : vector<32x128xf32>
    %25 = tpu.matmul %23, %24, %cst_37 {dimension_numbers = #tpu.dot_dimension_numbers<[1], [0], [0], [1], [0, 0, 1, 1], [], []>} : vector<32x128xf32>, vector<128x128xf32>, vector<32x128xf32> -> vector<32x128xf32>
    %26 = arith.addf %22, %25 : vector<32x128xf32>
    %c0_38 = arith.constant 0 : index
    %c0_39 = arith.constant 0 : index
    %27 = vector.load %arg19[%c0_38, %c0_39] : memref<32x128xf32, #tpu.memory_space<vmem>>, vector<32x128xf32>
    tpu.vector_store %arg19[%c0_38, %c0_39], %26 {strides = array<i32>} : memref<32x128xf32, #tpu.memory_space<vmem>>, vector<32x128xf32>,
    %cst_40 = arith.constant 0.000000e+00 : f32
    %28 = vector.broadcast %cst_40 : f32 to vector<16x128xf32>
    %c0_41 = arith.constant 0 : index
    %c0_42 = arith.constant 0 : index
    %29 = vector.load %arg20[%c0_41, %c0_42] : memref<16x128xf32, #tpu.memory_space<vmem>>, vector<16x128xf32>
    tpu.vector_store %arg20[%c0_41, %c0_42], %28 {strides = array<i32>} : memref<16x128xf32, #tpu.memory_space<vmem>>, vector<16x128xf32>,
    %c0_i32_43 = arith.constant 0 : i32
    %c32_i32_44 = arith.constant 32 : i32
    %30 = arith.addi %c0_i32_43, %c32_i32_44 : i32
    %c1_i32_45 = arith.constant 1 : i32
    scf.for %arg23 = %c0_i32_43 to %30 step %c1_i32_45  : i32 {
      %67 = arith.index_cast %arg23 : i32 to index
      %68 = memref.load %arg1[%67] : memref<32xi32, #tpu.memory_space<smem>>
      %69 = arith.index_cast %68 : i32 to index
      %c0_88 = arith.constant 0 : index
      %70 = vector.load %arg20[%69, %c0_88] : memref<16x128xf32, #tpu.memory_space<vmem>>, vector<1x128xf32>
      %71 = arith.index_cast %arg23 : i32 to index
      %c0_89 = arith.constant 0 : index
      %72 = vector.load %arg19[%71, %c0_89] : memref<32x128xf32, #tpu.memory_space<vmem>>, vector<1x128xf32>
      %73 = arith.addf %70, %72 : vector<1x128xf32>
      %74 = arith.index_cast %68 : i32 to index
      %c0_90 = arith.constant 0 : index
      %75 = vector.load %arg20[%74, %c0_90] : memref<16x128xf32, #tpu.memory_space<vmem>>, vector<1x128xf32>
      tpu.vector_store %arg20[%74, %c0_90], %73 {strides = array<i32>} : memref<16x128xf32, #tpu.memory_space<vmem>>, vector<1x128xf32>,
    }
    %c32_i32_46 = arith.constant 32 : i32
    %c0_47 = arith.constant 0 : index
    %c0_48 = arith.constant 0 : index
    %31 = vector.load %arg18[%c0_47, %c0_48] : memref<16x128xf32, #tpu.memory_space<vmem>>, vector<16x128xf32>
    %c0_49 = arith.constant 0 : index
    %c0_50 = arith.constant 0 : index
    %32 = vector.load %arg20[%c0_49, %c0_50] : memref<16x128xf32, #tpu.memory_space<vmem>>, vector<16x128xf32>
    %33 = arith.addf %31, %32 : vector<16x128xf32>
    %c0_51 = arith.constant 0 : index
    %c0_52 = arith.constant 0 : index
    %34 = vector.load %arg8[%c0_51, %c0_52] : memref<128x128xf32, #tpu.memory_space<vmem>>, vector<128x128xf32>
    %cst_53 = arith.constant dense<0.000000e+00> : vector<16x128xf32>
    %35 = tpu.matmul %33, %34, %cst_53 {dimension_numbers = #tpu.dot_dimension_numbers<[1], [0], [0], [1], [0, 0, 1, 1], [], []>} : vector<16x128xf32>, vector<128x128xf32>, vector<16x128xf32> -> vector<16x128xf32>
    %c0_54 = arith.constant 0 : index
    %c0_55 = arith.constant 0 : index
    %36 = vector.load %arg9[%c0_54, %c0_55] : memref<1x128xf32, #tpu.memory_space<vmem>>, vector<1x128xf32>
    %37 = vector.broadcast %36 : vector<1x128xf32> to vector<16x128xf32>
    %38 = arith.addf %35, %37 : vector<16x128xf32>
    %cst_56 = arith.constant 0.000000e+00 : f32
    %39 = vector.broadcast %cst_56 : f32 to vector<16x128xf32>
    %40 = arith.maximumf %38, %39 : vector<16x128xf32>
    %c0_57 = arith.constant 0 : index
    %c0_58 = arith.constant 0 : index
    %41 = vector.load %arg21[%c0_57, %c0_58] : memref<16x128xf32, #tpu.memory_space<vmem>>, vector<16x128xf32>
    tpu.vector_store %arg21[%c0_57, %c0_58], %40 {strides = array<i32>} : memref<16x128xf32, #tpu.memory_space<vmem>>, vector<16x128xf32>,
    %c0_i32_59 = arith.constant 0 : i32
    %c32_i32_60 = arith.constant 32 : i32
    %42 = arith.addi %c0_i32_59, %c32_i32_60 : i32
    %c1_i32_61 = arith.constant 1 : i32
    scf.for %arg23 = %c0_i32_59 to %42 step %c1_i32_61  : i32 {
      %67 = arith.index_cast %arg23 : i32 to index
      %68 = memref.load %arg0[%67] : memref<32xi32, #tpu.memory_space<smem>>
      %69 = arith.index_cast %68 : i32 to index
      %c0_88 = arith.constant 0 : index
      %70 = vector.load %arg21[%69, %c0_88] : memref<16x128xf32, #tpu.memory_space<vmem>>, vector<1x128xf32>
      %71 = arith.index_cast %arg23 : i32 to index
      %c0_89 = arith.constant 0 : index
      %72 = vector.load %arg19[%71, %c0_89] : memref<32x128xf32, #tpu.memory_space<vmem>>, vector<1x128xf32>
      tpu.vector_store %arg19[%71, %c0_89], %70 {strides = array<i32>} : memref<32x128xf32, #tpu.memory_space<vmem>>, vector<1x128xf32>,
    }
    %c32_i32_62 = arith.constant 32 : i32
    %c0_i32_63 = arith.constant 0 : i32
    %c32_i32_64 = arith.constant 32 : i32
    %43 = arith.addi %c0_i32_63, %c32_i32_64 : i32
    %c1_i32_65 = arith.constant 1 : i32
    scf.for %arg23 = %c0_i32_63 to %43 step %c1_i32_65  : i32 {
      %67 = arith.index_cast %arg23 : i32 to index
      %68 = memref.load %arg1[%67] : memref<32xi32, #tpu.memory_space<smem>>
      %69 = arith.index_cast %68 : i32 to index
      %c0_88 = arith.constant 0 : index
      %70 = vector.load %arg21[%69, %c0_88] : memref<16x128xf32, #tpu.memory_space<vmem>>, vector<1x128xf32>
      %71 = arith.index_cast %arg23 : i32 to index
      %c0_89 = arith.constant 0 : index
      %72 = vector.load %arg22[%71, %c0_89] : memref<32x128xf32, #tpu.memory_space<vmem>>, vector<1x128xf32>
      tpu.vector_store %arg22[%71, %c0_89], %70 {strides = array<i32>} : memref<32x128xf32, #tpu.memory_space<vmem>>, vector<1x128xf32>,
    }
    %c32_i32_66 = arith.constant 32 : i32
    %c0_67 = arith.constant 0 : index
    %c0_68 = arith.constant 0 : index
    %44 = vector.load %arg19[%c0_67, %c0_68] : memref<32x128xf32, #tpu.memory_space<vmem>>, vector<32x128xf32>
    %c0_69 = arith.constant 0 : index
    %c0_70 = arith.constant 0 : index
    %45 = vector.load %arg10[%c0_69, %c0_70] : memref<128x128xf32, #tpu.memory_space<vmem>>, vector<128x128xf32>
    %cst_71 = arith.constant dense<0.000000e+00> : vector<32x128xf32>
    %46 = tpu.matmul %44, %45, %cst_71 {dimension_numbers = #tpu.dot_dimension_numbers<[1], [0], [0], [1], [0, 0, 1, 1], [], []>} : vector<32x128xf32>, vector<128x128xf32>, vector<32x128xf32> -> vector<32x128xf32>
    %c0_72 = arith.constant 0 : index
    %c0_73 = arith.constant 0 : index
    %47 = vector.load %arg22[%c0_72, %c0_73] : memref<32x128xf32, #tpu.memory_space<vmem>>, vector<32x128xf32>
    %c0_74 = arith.constant 0 : index
    %c0_75 = arith.constant 0 : index
    %48 = vector.load %arg11[%c0_74, %c0_75] : memref<128x128xf32, #tpu.memory_space<vmem>>, vector<128x128xf32>
    %cst_76 = arith.constant dense<0.000000e+00> : vector<32x128xf32>
    %49 = tpu.matmul %47, %48, %cst_76 {dimension_numbers = #tpu.dot_dimension_numbers<[1], [0], [0], [1], [0, 0, 1, 1], [], []>} : vector<32x128xf32>, vector<128x128xf32>, vector<32x128xf32> -> vector<32x128xf32>
    %50 = arith.addf %46, %49 : vector<32x128xf32>
    %c0_77 = arith.constant 0 : index
    %c0_78 = arith.constant 0 : index
    %51 = vector.load %arg12[%c0_77, %c0_78] : memref<1x128xf32, #tpu.memory_space<vmem>>, vector<1x128xf32>
    %52 = vector.broadcast %51 : vector<1x128xf32> to vector<32x128xf32>
    %53 = arith.addf %50, %52 : vector<32x128xf32>
    %cst_79 = arith.constant 0.000000e+00 : f32
    %54 = vector.broadcast %cst_79 : f32 to vector<32x128xf32>
    %55 = arith.maximumf %53, %54 : vector<32x128xf32>
    %c0_80 = arith.constant 0 : index
    %c0_81 = arith.constant 0 : index
    %56 = vector.load %arg13[%c0_80, %c0_81] : memref<128x1xf32, #tpu.memory_space<vmem>>, vector<128x1xf32>
    %cst_82 = arith.constant dense<0.000000e+00> : vector<32x1xf32>
    %57 = tpu.matmul %55, %56, %cst_82 {dimension_numbers = #tpu.dot_dimension_numbers<[1], [0], [0], [1], [0, 0, 1, 1], [], []>} : vector<32x128xf32>, vector<128x1xf32>, vector<32x1xf32> -> vector<32x1xf32>
    %c0_83 = arith.constant 0 : index
    %c0_84 = arith.constant 0 : index
    %58 = vector.load %arg14[%c0_83, %c0_84] : memref<1x1xf32, #tpu.memory_space<vmem>>, vector<1x1xf32>
    %59 = vector.broadcast %58 : vector<1x1xf32> to vector<32x1xf32>
    %60 = arith.addf %57, %59 : vector<32x1xf32>
    %61 = arith.negf %60 : vector<32x1xf32>
    %62 = math.exp %61 : vector<32x1xf32>
    %cst_85 = arith.constant 1.000000e+00 : f32
    %63 = vector.broadcast %cst_85 : f32 to vector<32x1xf32>
    %64 = arith.addf %63, %62 : vector<32x1xf32>
    %65 = arith.divf %63, %64 : vector<32x1xf32>
    %c0_86 = arith.constant 0 : index
    %c0_87 = arith.constant 0 : index
    %66 = vector.load %arg15[%c0_86, %c0_87] : memref<32x1xf32, #tpu.memory_space<vmem>>, vector<32x1xf32>
    tpu.vector_store %arg15[%c0_86, %c0_87], %65 {strides = array<i32>} : memref<32x1xf32, #tpu.memory_space<vmem>>, vector<32x1xf32>,
    return
  }
}

</mosaic_0001>

<bundles_post_ra>
// kernel: tpu_custom_call.1
= control target key start
LH: loop header
LB: loop body
LE: loop exit
PB: predicated region body
PF: predicated region fallthrough
CT: control target
= control target key end

     0   :  { %s1400_s0 = inlined_call_operand.vmem [shape: s32[32], index: 0, kind: input, shape index: {}]   ;;  %s1401_s1 = inlined_call_operand.vmem [shape: s32[32], index: 1, kind: input, shape index: {}]   ;;  %s1402_s2 = inlined_call_operand.hbm [shape: f32[16,128], index: 2, kind: input, shape index: {}]   ;;  %s1403_s3 = inlined_call_operand.hbm [shape: f32[32,128], index: 3, kind: input, shape index: {}]   ;;  %s1404_s4 = inlined_call_operand.vmem [shape: f32[128,128], index: 4, kind: input, shape index: {}]   ;;  %s1405_s5 = inlined_call_operand.hbm [shape: f32[128,128], index: 5, kind: input, shape index: {}]   ;;  %s1406_s6 = inlined_call_operand.vmem [shape: f32[1,128], index: 6, kind: input, shape index: {}]   ;;  %s1407_s7 = inlined_call_operand.hbm [shape: f32[128,128], index: 7, kind: input, shape index: {}]   ;;  %s1408_s8 = inlined_call_operand.hbm [shape: f32[128,128], index: 8, kind: input, shape index: {}]   ;;  %s1409_s9 = inlined_call_operand.vmem [shape: f32[1,128], index: 9, kind: input, shape index: {}]   ;;  %s1410_s10 = inlined_call_operand.hbm [shape: f32[128,128], index: 10, kind: input, shape index: {}]   ;;  %s1411_s11 = inlined_call_operand.hbm [shape: f32[128,128], index: 11, kind: input, shape index: {}]   ;;  %s1412_s12 = inlined_call_operand.vmem [shape: f32[1,128], index: 12, kind: input, shape index: {}]   ;;  %s1413_s13 = inlined_call_operand.vmem [shape: f32[128,1], index: 13, kind: input, shape index: {}]   ;;  %s1414_s14 = inlined_call_operand.<no memory space> [shape: f32[1,1], index: 14, kind: input, shape index: {}]   ;;  %s1415_s15 = inlined_call_operand.vmem [shape: f32[32,1], index: 15, kind: output, shape index: {}]  }
   0x1   :  { %v20_v0 = vstv %s1414_s14 }
   0x2   :  { %21 = vst [vmem:[#allocation9] sm:$0x1] %v20_v0 }
   0x3   :  { %22 = vsyncpa [#allocation12], 0 }
   0x4   :  { %23 = vsyncpa [#allocation14], 0 }
   0x5   :  { %24 = vsyncpa [#allocation11], 0 }
   0x6   :  { %25 = vsyncpa [#allocation17], 0 }
   0x7   :  { %26 = vsyncpa [#allocation20], 0 }
   0x8   :  { %27 = vsyncpa [#allocation23], 0  ;;  %s63_s22 = sshll.u32 %s1403_s3, 4  ;;  %s1132_s23 = smov [#allocation16]   ;;  %s64_s22 = int_to_ptr.hbm [resolvable:$true] %s63_s22 }
   0x9   :  { %s65_s24 = sshll.u32 %s1132_s23, 4  ;;  %s93_s27 = sshll.u32 %s1407_s7, 4  ;;  %s66_s24 = int_to_ptr.vmem [resolvable:$true] %s65_s24  ;;  %s94_s27 = int_to_ptr.hbm [resolvable:$true] %s93_s27 }
   0xa   :  { %s1133_s14 = smov 128   ;;  %s1134_s28 = smov 8  }
   0xb   :  { %71 = dma.hbm_to_vmem [thread:$0]  %s64_s22, 512, %s66_s24, [#allocation17], %s1133_s14, %s1133_s14, %s1134_s28  }
   0xc   :  { %s1135_s29 = smov [#allocation19]   ;;  %s121_s3 = sshll.u32 %s1410_s10, 4  ;;  %s122_s3 = int_to_ptr.hbm [resolvable:$true] %s121_s3 }
   0xd   :  { %s95_s30 = sshll.u32 %s1135_s29, 4  ;;  %s33_s19 = sshll.u32 %s1400_s0, 4  ;;  %s96_s30 = int_to_ptr.vmem [resolvable:$true] %s95_s30  ;;  %s34_s19 = int_to_ptr.vmem [resolvable:$true] %s33_s19 }
   0xe   :  { %101 = dma.hbm_to_vmem [thread:$0]  %s94_s27, 2048, %s96_s30, [#allocation20], %s1133_s14, %s1133_s14, %s1134_s28  }
   0xf   :  { %s1136_s20 = smov [#allocation22]   ;;  %s1137_s22 = smov [#allocation10]  }
  0x10   :  { %s123_s21 = sshll.u32 %s1136_s20, 4  ;;  %s42_s24 = sshll.u32 %s1401_s1, 4  ;;  %s124_s21 = int_to_ptr.vmem [resolvable:$true] %s123_s21  ;;  %s43_s24 = int_to_ptr.vmem [resolvable:$true] %s42_s24 }
  0x11   :  { %129 = dma.hbm_to_vmem [thread:$0]  %s122_s3, 2048, %s124_s21, [#allocation23], %s1133_s14, %s1133_s14, %s1134_s28  }
  0x12   :  { %36 = dma.vmem_to_smem %s34_s19, 16, %s1137_s22, [#allocation12]  }
  0x13   :  { %s50_s27 = sshll.u32 %s1402_s2, 4  ;;  %s1138_s0 = smov [#allocation13]   ;;  %s51_s27 = int_to_ptr.hbm [resolvable:$true] %s50_s27 }
  0x14   :  { %45 = dma.vmem_to_smem %s43_s24, 16, %s1138_s0, [#allocation14]  }
  0x15   :  { %s1139_s29 = smov [#allocation15]   ;;  %s78_s3 = sshll.u32 %s1405_s5, 4  ;;  %s79_s3 = int_to_ptr.hbm [resolvable:$true] %s78_s3 }
  0x16   :  { %s52_s30 = sshll.u32 %s1139_s29, 4  ;;  %s106_s18 = sshll.u32 %s1408_s8, 4  ;;  %s53_s30 = int_to_ptr.vmem [resolvable:$true] %s52_s30  ;;  %s107_s18 = int_to_ptr.hbm [resolvable:$true] %s106_s18 }
  0x17   :  { %58 = dma.hbm_to_vmem [thread:$0]  %s51_s27, 256, %s53_s30, [#allocation11], %s1133_s14, %s1133_s14, %s1134_s28  }
  0x18   :  { %s1140_s2 = smov [#allocation18]   ;;  %s1141_s20 = smov [#allocation21]  }
  0x19   :  { %s80_s19 = sshll.u32 %s1140_s2, 4  ;;  %s108_s5 = sshll.u32 %s1141_s20, 4  ;;  %s81_s19 = int_to_ptr.vmem [resolvable:$true] %s80_s19  ;;  %s109_s5 = int_to_ptr.vmem [resolvable:$true] %s108_s5 }
  0x1a   :  { %86 = dma.hbm_to_vmem [thread:$0]  %s79_s3, 2048, %s81_s19, [#allocation17], %s1133_s14, %s1133_s14, %s1134_s28  }
  0x1b   :  { %s134_s10 = sshll.u32 %s1411_s11, 4  ;;  %s1142_s8 = smov [#allocation24]   ;;  %s135_s10 = int_to_ptr.hbm [resolvable:$true] %s134_s10 }
  0x1c   :  { %114 = dma.hbm_to_vmem [thread:$0]  %s107_s18, 2048, %s109_s5, [#allocation20], %s1133_s14, %s1133_s14, %s1134_s28  }
  0x1d   :  { %s136_s23 = sshll.u32 %s1142_s8, 4  ;;  %s137_s23 = int_to_ptr.vmem [resolvable:$true] %s136_s23 }
  0x1e   :  { %142 = dma.hbm_to_vmem [thread:$0]  %s135_s10, 2048, %s137_s23, [#allocation23], %s1133_s14, %s1133_s14, %s1134_s28  }
  0x1f   :  { %1096 = dma.done.wait [#allocation12], 16  }
  0x20   :  { %1097 = vsyncadd [#allocation12], 4294967280 }
  0x21   :  { %1098 = dma.done.wait [#allocation14], 16  }
  0x22   :  { %1099 = vsyncadd [#allocation14], 4294967280 }
  0x23   :  { %1100 = dma.done.wait [#allocation11], 256  }
  0x24   :  { %1101 = vsyncadd [#allocation11], 4294967040 }
  0x25   :  { %1102 = dma.done.wait [#allocation17], 2560  }
  0x26   :  { %1103 = vsyncadd [#allocation17], 4294964736 }
  0x27   :  { %1104 = dma.done.wait [#allocation20], 4096  }
  0x28   :  { %1105 = vsyncadd [#allocation20], 4294963200 }
  0x29   :  { %1106 = dma.done.wait [#allocation23], 4096  }
  0x2a   :  { %1107 = vsyncadd [#allocation23], 4294963200 }
  0x2b   :  { %185 = sfence }
  0x2c   :  { %s1108_s11 = smov 0  }
  0x2d LB: > { %s192_s24 = sld [smem:[#allocation10 + %s1110_s11]]  ;;  %s195_s14 = scalar_lea.vmem [#allocation2], %s1110_s11  ;;  %s1110_s11 = sphi %s1108_s11, %s191_s11  }
  0x2e   : > { %s191_s11 = sadd.s32 1, %s1110_s11  }
  0x2f   : > { %p188_p0 = scmp.ge.s32.totalorder %s191_s11, 32  }
  0x30   :  { %v220_v2 = vld [vmem:[%s1404_s4 + $0x78] sm:$0xff] (%p188_p0)  ;;  %v219_v3 = vld [vmem:[%s1404_s4 + $0x70] sm:$0xff] (%p188_p0)  ;;  %v218_v4 = vld [vmem:[%s1404_s4 + $0x68] sm:$0xff] (%p188_p0)  ;;  %v1143_v22 = vmov (%p188_p0), 0.0  }
  0x31   :  { %190 = sbr.rel (!%p188_p0) target bundleno = 45 (0x2d), region = 170  ;;  %221 = vmatpush.msra.mxu3 (%p188_p0), %v220_v2  ;;  %v217_v5 = vld [vmem:[%s1404_s4 + $0x60] sm:$0xff] (%p188_p0)  ;;  %v216_v6 = vld [vmem:[%s1404_s4 + $0x58] sm:$0xff] (%p188_p0)  ;;  %v215_v7 = vld [vmem:[%s1404_s4 + $0x50] sm:$0xff] (%p188_p0)  ;;  %258 = vst [vmem:[#allocation3] sm:$0xff] (%p188_p0), %v1143_v22 }
  0x32   :  { %v214_v8 = vld [vmem:[%s1404_s4 + $0x48] sm:$0xff] (%p188_p0)  ;;  %v213_v9 = vld [vmem:[%s1404_s4 + $0x40] sm:$0xff] (%p188_p0)  ;;  %v212_v10 = vld [vmem:[%s1404_s4 + $0x38] sm:$0xff] (%p188_p0)  ;;  %259 = vst [vmem:[#allocation3 + $0x8] sm:$0xff] (%p188_p0), %v1143_v22 }
  0x33   : > { %s193_s25 = scalar_lea.vmem [#allocation15], %s192_s24  ;;  %222 = vmatpush.msra.mxu3 (%p188_p0), %v219_v3  ;;  %v211_v11 = vld [vmem:[%s1404_s4 + $0x30] sm:$0xff] (%p188_p0)  ;;  %v210_v12 = vld [vmem:[%s1404_s4 + $0x28] sm:$0xff] (%p188_p0)  ;;  %v209_v13 = vld [vmem:[%s1404_s4 + $0x20] sm:$0xff] (%p188_p0) }
  0x34   : > { %v194_v1 = vld [vmem:[%s193_s25] sm:$0x1]  ;;  %v208_v14 = vld [vmem:[%s1404_s4 + $0x18] sm:$0xff] (%p188_p0)  ;;  %v207_v15 = vld [vmem:[%s1404_s4 + $0x10] sm:$0xff] (%p188_p0) }
  0x35   : > { %196 = vst [vmem:[%s195_s14] sm:$0x1] %v194_v1  ;;  %223 = vmatpush.msra.mxu3 (%p188_p0), %v218_v4  ;;  %v206_v16 = vld [vmem:[%s1404_s4 + $0x8] sm:$0xff] (%p188_p0)  ;;  %v205_v17 = vld [vmem:[%s1404_s4] sm:$0xff] (%p188_p0)  ;;  %v201_v18 = vld [vmem:[#allocation16] sm:$0xff] (%p188_p0)  ;;  %s1112_s4 = smov (%p188_p0), 0  }
  0x36   :  { %v202_v19 = vld [vmem:[#allocation16 + $0x8] sm:$0xff]  ;;  %v203_v20 = vld [vmem:[#allocation16 + $0x10] sm:$0xff]  ;;  %v204_v21 = vld [vmem:[#allocation16 + $0x18] sm:$0xff] }
  0x37   :  { %224 = vmatpush.msra.mxu3 %v217_v5 }
  0x39   :  { %225 = vmatpush.msra.mxu3 %v216_v6 }
  0x3b   :  { %226 = vmatpush.msra.mxu3 %v215_v7 }
  0x3c   :  { %v197_v23 = vld [vmem:[#allocation2] sm:$0xff]  ;;  %v198_v26 = vld [vmem:[#allocation2 + $0x8] sm:$0xff]  ;;  %v199_v29 = vld [vmem:[#allocation2 + $0x10] sm:$0xff] }
  0x3d   :  { %227 = vmatpush.msra.mxu3 %v214_v8  ;;  %v200_v32 = vld [vmem:[#allocation2 + $0x18] sm:$0xff] }
  0x3f   :  { %228 = vmatpush.msra.mxu3 %v213_v9 }
  0x41   :  { %229 = vmatpush.msra.mxu3 %v212_v10 }
  0x43   :  { %230 = vmatpush.msra.mxu3 %v211_v11 }
  0x45   :  { %231 = vmatpush.msra.mxu3 %v210_v12 }
  0x47   :  { %232 = vmatpush.msra.mxu3 %v209_v13 }
  0x49   :  { %233 = vmatpush.msra.mxu3 %v208_v14 }
  0x4b   :  { %234 = vmatpush.msra.mxu3 %v207_v15 }
  0x4d   :  { %235 = vmatpush.msra.mxu3 %v206_v16 }
  0x4f   :  { %236 = vmatpush.msra.mxu3 %v205_v17 }
  0x50   :  { %237 = vmatmul.f32.vlgmr.msra.gmra.mxu3 %v201_v18 }
  0x58   :  { %240 = vmatmul.f32.gmra.mxu3 %v202_v19 }
  0x60   :  { %243 = vmatmul.f32.gmra.mxu3 %v203_v20 }
  0x68   :  { %246 = vmatmul.f32.gmra.mxu3 %v204_v21 }
  0xd3   :  { %v238_v24 = vpop.f32.mrf.mxu3 }
  0xd4   :  { %v250_v25 = vadd.f32 %v238_v24, %v197_v23 }
  0xd6   :  { %254 = vst [vmem:[#allocation2] sm:$0xff] %v250_v25 }
  0xdb   :  { %v241_v27 = vpop.f32.mrf.mxu3 }
  0xdc   :  { %v251_v28 = vadd.f32 %v241_v27, %v198_v26 }
  0xde   :  { %255 = vst [vmem:[#allocation2 + $0x8] sm:$0xff] %v251_v28 }
  0xe3   :  { %v244_v30 = vpop.f32.mrf.mxu3 }
  0xe4   :  { %v252_v31 = vadd.f32 %v244_v30, %v199_v29 }
  0xe6   :  { %256 = vst [vmem:[#allocation2 + $0x10] sm:$0xff] %v252_v31 }
  0xeb   :  { %v247_v33 = vpop.f32.mrf.mxu3 }
  0xec   :  { %v253_v34 = vadd.f32 %v247_v33, %v200_v32 }
  0xee   :  { %257 = vst [vmem:[#allocation2 + $0x18] sm:$0xff] %v253_v34 }
  0xef LB: > { %s266_s17 = sld [smem:[#allocation13 + %s1114_s4]]  ;;  %s269_s3 = scalar_lea.vmem [#allocation2], %s1114_s4  ;;  %s1114_s4 = sphi %s1112_s4, %s265_s4  }
  0xf0   : > { %s265_s4 = sadd.s32 1, %s1114_s4  }
  0xf1   : > { %p262_p1 = scmp.ge.s32.totalorder %s265_s4, 32  }
  0xf2   :  { %v294_v38 = vld [vmem:[#allocation18 + $0x78] sm:$0xff] (%p262_p1)  ;;  %v293_v39 = vld [vmem:[#allocation18 + $0x70] sm:$0xff] (%p262_p1)  ;;  %v292_v40 = vld [vmem:[#allocation18 + $0x68] sm:$0xff] (%p262_p1)  ;;  %s1116_s2 = smov (%p262_p1), 0  }
  0xf3   :  { %299 = vmatpush.msra.mxu1 (%p262_p1), %v294_v38  ;;  %v291_v41 = vld [vmem:[#allocation18 + $0x60] sm:$0xff] (%p262_p1)  ;;  %v290_v42 = vld [vmem:[#allocation18 + $0x58] sm:$0xff] (%p262_p1)  ;;  %v289_v43 = vld [vmem:[#allocation18 + $0x50] sm:$0xff] (%p262_p1) }
  0xf4   :  { %v288_v44 = vld [vmem:[#allocation18 + $0x48] sm:$0xff] (%p262_p1)  ;;  %v287_v45 = vld [vmem:[#allocation18 + $0x40] sm:$0xff] (%p262_p1)  ;;  %v286_v46 = vld [vmem:[#allocation18 + $0x38] sm:$0xff] (%p262_p1) }
  0xf5   : > { %v270_v35 = vld [vmem:[%s269_s3] sm:$0x1]  ;;  %s267_s1 = scalar_lea.vmem [#allocation3], %s266_s17  ;;  %264 = sbr.rel (!%p262_p1) target bundleno = 239 (0xef), region = 181  ;;  %300 = vmatpush.msra.mxu1 (%p262_p1), %v293_v39  ;;  %v285_v47 = vld [vmem:[#allocation18 + $0x30] sm:$0xff] (%p262_p1)  ;;  %v283_v49 = vld [vmem:[#allocation18 + $0x20] sm:$0xff] (%p262_p1) }
  0xf6   : > { %v268_v36 = vld [vmem:[%s267_s1] sm:$0x1]  ;;  %v282_v50 = vld [vmem:[#allocation18 + $0x18] sm:$0xff] (%p262_p1)  ;;  %v281_v51 = vld [vmem:[#allocation18 + $0x10] sm:$0xff] (%p262_p1) }
  0xf7   : > { %v271_v37 = vadd.f32 %v270_v35, %v268_v36  ;;  %301 = vmatpush.msra.mxu1 (%p262_p1), %v292_v40  ;;  %v284_v48 = vld [vmem:[#allocation18 + $0x28] sm:$0xff] (%p262_p1)  ;;  %v273_v52 = vld [vmem:[#allocation15] sm:$0xff] (%p262_p1)  ;;  %v279_v55 = vld [vmem:[#allocation18] sm:$0xff] (%p262_p1) }
  0xf8   :  { %v280_v54 = vld [vmem:[#allocation18 + $0x8] sm:$0xff] (%p262_p1)  ;;  %v274_v57 = vld [vmem:[#allocation15 + $0x8] sm:$0xff] (%p262_p1) }
  0xf9   : > { %272 = vst [vmem:[%s267_s1] sm:$0x1] %v271_v37  ;;  %302 = vmatpush.msra.mxu1 (%p262_p1), %v291_v41  ;;  %v860_v60 = vld [vmem:[%s1406_s6] ss:$0 sm:$0xff] (%p262_p1) }
  0xfb   :  { %303 = vmatpush.msra.mxu1 %v290_v42 }
  0xfd   :  { %304 = vmatpush.msra.mxu1 %v289_v43 }
  0xff   :  { %305 = vmatpush.msra.mxu1 %v288_v44 }
 0x100   :  { %v275_v53 = vld [vmem:[#allocation3] sm:$0xff]  ;;  %v276_v58 = vld [vmem:[#allocation3 + $0x8] sm:$0xff] }
 0x101   :  { %306 = vmatpush.msra.mxu1 %v287_v45  ;;  %v277_v56 = vadd.f32 %v275_v53, %v273_v52  ;;  %v278_v59 = vadd.f32 %v276_v58, %v274_v57 }
 0x103   :  { %307 = vmatpush.msra.mxu1 %v286_v46 }
 0x105   :  { %308 = vmatpush.msra.mxu1 %v285_v47 }
 0x107   :  { %309 = vmatpush.msra.mxu1 %v284_v48 }
 0x109   :  { %310 = vmatpush.msra.mxu1 %v283_v49 }
 0x10b   :  { %311 = vmatpush.msra.mxu1 %v282_v50 }
 0x10d   :  { %312 = vmatpush.msra.mxu1 %v281_v51 }
 0x10f   :  { %313 = vmatpush.msra.mxu1 %v280_v54 }
 0x111   :  { %314 = vmatpush.msra.mxu1 %v279_v55 }
 0x112   :  { %315 = vmatmul.f32.vlgmr.msra.gmra.mxu1 %v277_v56 }
 0x11a   :  { %318 = vmatmul.f32.gmra.mxu1 %v278_v59 }
 0x18f   :  { %v316_v61 = vpop.f32.mrf.mxu1 }
 0x190   :  { %v317_v62 = vadd.f32 %v860_v60, %v316_v61 }
 0x192   :  { %v322_v63 = vmax.f32 %v317_v62, 0.0 }
 0x194   :  { %324 = vst [vmem:[#allocation4] sm:$0xff] %v322_v63 }
 0x197   :  { %v319_v0 = vpop.f32.mrf.mxu1 }
 0x198   :  { %v320_v1 = vadd.f32 %v860_v60, %v319_v0 }
 0x19a   :  { %v323_v2 = vmax.f32 %v320_v1, 0.0 }
 0x19c   :  { %325 = vst [vmem:[#allocation4 + $0x8] sm:$0xff] %v323_v2 }
 0x19d LB: > { %s332_s19 = sld [smem:[#allocation10 + %s1118_s2]]  ;;  %s335_s5 = scalar_lea.vmem [#allocation5], %s1118_s2  ;;  %s1118_s2 = sphi %s1116_s2, %s331_s2  }
 0x19e   : > { %s331_s2 = sadd.s32 1, %s1118_s2  }
 0x19f   : > { %p328_p2 = scmp.ge.s32.totalorder %s331_s2, 32  }
 0x1a0   :  { %v360_v4 = vld [vmem:[#allocation19 + $0x78] sm:$0xff] (%p328_p2)  ;;  %v359_v5 = vld [vmem:[#allocation19 + $0x70] sm:$0xff] (%p328_p2)  ;;  %398 = vst [vmem:[#allocation6] sm:$0xff] (%p328_p2), %v1143_v22  ;;  %v358_v6 = vld [vmem:[#allocation19 + $0x68] sm:$0xff] (%p328_p2)  ;;  %s1120_s6 = smov (%p328_p2), 0  }
 0x1a1   :  { %330 = sbr.rel (!%p328_p2) target bundleno = 413 (0x19d), region = 192  ;;  %361 = vmatpush.msra.mxu2 (%p328_p2), %v360_v4  ;;  %399 = vst [vmem:[#allocation6 + $0x8] sm:$0xff] (%p328_p2), %v1143_v22  ;;  %v357_v7 = vld [vmem:[#allocation19 + $0x60] sm:$0xff] (%p328_p2)  ;;  %v356_v8 = vld [vmem:[#allocation19 + $0x58] sm:$0xff] (%p328_p2)  ;;  %v355_v9 = vld [vmem:[#allocation19 + $0x50] sm:$0xff] (%p328_p2) }
 0x1a2   :  { %v354_v10 = vld [vmem:[#allocation19 + $0x48] sm:$0xff] (%p328_p2)  ;;  %v353_v11 = vld [vmem:[#allocation19 + $0x40] sm:$0xff] (%p328_p2)  ;;  %v352_v12 = vld [vmem:[#allocation19 + $0x38] sm:$0xff] (%p328_p2) }
 0x1a3   : > { %s333_s20 = scalar_lea.vmem [#allocation4], %s332_s19  ;;  %362 = vmatpush.msra.mxu2 (%p328_p2), %v359_v5  ;;  %v351_v13 = vld [vmem:[#allocation19 + $0x30] sm:$0xff] (%p328_p2)  ;;  %v350_v14 = vld [vmem:[#allocation19 + $0x28] sm:$0xff] (%p328_p2)  ;;  %v349_v15 = vld [vmem:[#allocation19 + $0x20] sm:$0xff] (%p328_p2) }
 0x1a4   : > { %v334_v3 = vld [vmem:[%s333_s20] sm:$0x1]  ;;  %v348_v16 = vld [vmem:[#allocation19 + $0x18] sm:$0xff] (%p328_p2)  ;;  %v347_v17 = vld [vmem:[#allocation19 + $0x10] sm:$0xff] (%p328_p2) }
 0x1a5   : > { %336 = vst [vmem:[%s335_s5] sm:$0x1] %v334_v3  ;;  %363 = vmatpush.msra.mxu2 (%p328_p2), %v358_v6  ;;  %v346_v18 = vld [vmem:[#allocation19 + $0x8] sm:$0xff] (%p328_p2)  ;;  %v345_v19 = vld [vmem:[#allocation19] sm:$0xff] (%p328_p2)  ;;  %v343_v22 = vld [vmem:[#allocation16 + $0x10] sm:$0xff] (%p328_p2) }
 0x1a6   :  { %v341_v20 = vld [vmem:[#allocation16] sm:$0xff]  ;;  %v342_v21 = vld [vmem:[#allocation16 + $0x8] sm:$0xff]  ;;  %v344_v23 = vld [vmem:[#allocation16 + $0x18] sm:$0xff] }
 0x1a7   :  { %364 = vmatpush.msra.mxu2 %v357_v7 }
 0x1a9   :  { %365 = vmatpush.msra.mxu2 %v356_v8 }
 0x1ab   :  { %366 = vmatpush.msra.mxu2 %v355_v9 }
 0x1ac   :  { %v337_v24 = vld [vmem:[#allocation5] sm:$0xff]  ;;  %v338_v27 = vld [vmem:[#allocation5 + $0x8] sm:$0xff]  ;;  %v339_v30 = vld [vmem:[#allocation5 + $0x10] sm:$0xff] }
 0x1ad   :  { %367 = vmatpush.msra.mxu2 %v354_v10  ;;  %v340_v33 = vld [vmem:[#allocation5 + $0x18] sm:$0xff] }
 0x1af   :  { %368 = vmatpush.msra.mxu2 %v353_v11 }
 0x1b1   :  { %369 = vmatpush.msra.mxu2 %v352_v12 }
 0x1b3   :  { %370 = vmatpush.msra.mxu2 %v351_v13 }
 0x1b5   :  { %371 = vmatpush.msra.mxu2 %v350_v14 }
 0x1b7   :  { %372 = vmatpush.msra.mxu2 %v349_v15 }
 0x1b9   :  { %373 = vmatpush.msra.mxu2 %v348_v16 }
 0x1bb   :  { %374 = vmatpush.msra.mxu2 %v347_v17 }
 0x1bd   :  { %375 = vmatpush.msra.mxu2 %v346_v18 }
 0x1bf   :  { %376 = vmatpush.msra.mxu2 %v345_v19 }
 0x1c0   :  { %377 = vmatmul.f32.vlgmr.msra.gmra.mxu2 %v341_v20 }
 0x1c8   :  { %380 = vmatmul.f32.gmra.mxu2 %v342_v21 }
 0x1d0   :  { %383 = vmatmul.f32.gmra.mxu2 %v343_v22 }
 0x1d8   :  { %386 = vmatmul.f32.gmra.mxu2 %v344_v23 }
 0x243   :  { %v378_v25 = vpop.f32.mrf.mxu2 }
 0x244   :  { %v390_v26 = vadd.f32 %v378_v25, %v337_v24 }
 0x246   :  { %394 = vst [vmem:[#allocation5] sm:$0xff] %v390_v26 }
 0x24b   :  { %v381_v28 = vpop.f32.mrf.mxu2 }
 0x24c   :  { %v391_v29 = vadd.f32 %v381_v28, %v338_v27 }
 0x24e   :  { %395 = vst [vmem:[#allocation5 + $0x8] sm:$0xff] %v391_v29 }
 0x253   :  { %v384_v31 = vpop.f32.mrf.mxu2 }
 0x254   :  { %v392_v32 = vadd.f32 %v384_v31, %v339_v30 }
 0x256   :  { %396 = vst [vmem:[#allocation5 + $0x10] sm:$0xff] %v392_v32 }
 0x25b   :  { %v387_v34 = vpop.f32.mrf.mxu2 }
 0x25c   :  { %v393_v35 = vadd.f32 %v387_v34, %v340_v33 }
 0x25e   :  { %397 = vst [vmem:[#allocation5 + $0x18] sm:$0xff] %v393_v35 }
 0x25f LB: > { %s406_s21 = sld [smem:[#allocation13 + %s1122_s6]]  ;;  %s409_s22 = scalar_lea.vmem [#allocation5], %s1122_s6  ;;  %s1122_s6 = sphi %s1120_s6, %s405_s6  }
 0x260   : > { %s405_s6 = sadd.s32 1, %s1122_s6  }
 0x261   : > { %p402_p3 = scmp.ge.s32.totalorder %s405_s6, 32  }
 0x262   :  { %v434_v39 = vld [vmem:[#allocation21 + $0x78] sm:$0xff] (%p402_p3)  ;;  %v433_v40 = vld [vmem:[#allocation21 + $0x70] sm:$0xff] (%p402_p3)  ;;  %v432_v41 = vld [vmem:[#allocation21 + $0x68] sm:$0xff] (%p402_p3)  ;;  %s1124_s11 = smov (%p402_p3), 0  }
 0x263   :  { %439 = vmatpush.msrb.mxu3 (%p402_p3), %v434_v39  ;;  %v431_v42 = vld [vmem:[#allocation21 + $0x60] sm:$0xff] (%p402_p3)  ;;  %v430_v43 = vld [vmem:[#allocation21 + $0x58] sm:$0xff] (%p402_p3)  ;;  %v429_v44 = vld [vmem:[#allocation21 + $0x50] sm:$0xff] (%p402_p3) }
 0x264   :  { %v428_v45 = vld [vmem:[#allocation21 + $0x48] sm:$0xff] (%p402_p3)  ;;  %v427_v46 = vld [vmem:[#allocation21 + $0x40] sm:$0xff] (%p402_p3)  ;;  %v426_v47 = vld [vmem:[#allocation21 + $0x38] sm:$0xff] (%p402_p3) }
 0x265   : > { %v410_v36 = vld [vmem:[%s409_s22] sm:$0x1]  ;;  %s407_s10 = scalar_lea.vmem [#allocation6], %s406_s21  ;;  %404 = sbr.rel (!%p402_p3) target bundleno = 607 (0x25f), region = 203  ;;  %440 = vmatpush.msrb.mxu3 (%p402_p3), %v433_v40  ;;  %v425_v48 = vld [vmem:[#allocation21 + $0x30] sm:$0xff] (%p402_p3)  ;;  %v423_v50 = vld [vmem:[#allocation21 + $0x20] sm:$0xff] (%p402_p3) }
 0x266   : > { %v408_v37 = vld [vmem:[%s407_s10] sm:$0x1]  ;;  %v422_v51 = vld [vmem:[#allocation21 + $0x18] sm:$0xff] (%p402_p3)  ;;  %v421_v52 = vld [vmem:[#allocation21 + $0x10] sm:$0xff] (%p402_p3) }
 0x267   : > { %v411_v38 = vadd.f32 %v410_v36, %v408_v37  ;;  %441 = vmatpush.msrb.mxu3 (%p402_p3), %v432_v41  ;;  %v424_v49 = vld [vmem:[#allocation21 + $0x28] sm:$0xff] (%p402_p3)  ;;  %v413_v53 = vld [vmem:[#allocation4] sm:$0xff] (%p402_p3) }
 0x268   :  { %v420_v55 = vld [vmem:[#allocation21 + $0x8] sm:$0xff] (%p402_p3)  ;;  %v419_v56 = vld [vmem:[#allocation21] sm:$0xff] (%p402_p3) }
 0x269   : > { %412 = vst [vmem:[%s407_s10] sm:$0x1] %v411_v38  ;;  %442 = vmatpush.msrb.mxu3 (%p402_p3), %v431_v42  ;;  %v414_v58 = vld [vmem:[#allocation4 + $0x8] sm:$0xff] (%p402_p3)  ;;  %v861_v61 = vld [vmem:[%s1409_s9] ss:$0 sm:$0xff] (%p402_p3) }
 0x26b   :  { %443 = vmatpush.msrb.mxu3 %v430_v43 }
 0x26d   :  { %444 = vmatpush.msrb.mxu3 %v429_v44 }
 0x26f   :  { %445 = vmatpush.msrb.mxu3 %v428_v45 }
 0x270   :  { %v415_v54 = vld [vmem:[#allocation6] sm:$0xff]  ;;  %v416_v59 = vld [vmem:[#allocation6 + $0x8] sm:$0xff] }
 0x271   :  { %446 = vmatpush.msrb.mxu3 %v427_v46  ;;  %v417_v57 = vadd.f32 %v415_v54, %v413_v53  ;;  %v418_v60 = vadd.f32 %v416_v59, %v414_v58 }
 0x273   :  { %447 = vmatpush.msrb.mxu3 %v426_v47 }
 0x275   :  { %448 = vmatpush.msrb.mxu3 %v425_v48 }
 0x277   :  { %449 = vmatpush.msrb.mxu3 %v424_v49 }
 0x279   :  { %450 = vmatpush.msrb.mxu3 %v423_v50 }
 0x27b   :  { %451 = vmatpush.msrb.mxu3 %v422_v51 }
 0x27d   :  { %452 = vmatpush.msrb.mxu3 %v421_v52 }
 0x27f   :  { %453 = vmatpush.msrb.mxu3 %v420_v55 }
 0x281   :  { %454 = vmatpush.msrb.mxu3 %v419_v56 }
 0x282   :  { %455 = vmatmul.f32.vlgmr.msrb.gmra.mxu3 %v417_v57 }
 0x28a   :  { %458 = vmatmul.f32.gmra.mxu3 %v418_v60 }
 0x305   :  { %v456_v62 = vpop.f32.mrf.mxu3 }
 0x306   :  { %v457_v63 = vadd.f32 %v861_v61, %v456_v62 }
 0x308   :  { %v462_v0 = vmax.f32 %v457_v63, 0.0 }
 0x30a   :  { %464 = vst [vmem:[#allocation7] sm:$0xff] %v462_v0 }
 0x30d   :  { %v459_v1 = vpop.f32.mrf.mxu3 }
 0x30e   :  { %v460_v2 = vadd.f32 %v861_v61, %v459_v1 }
 0x310   :  { %v463_v3 = vmax.f32 %v460_v2, 0.0 }
 0x312   :  { %465 = vst [vmem:[#allocation7 + $0x8] sm:$0xff] %v463_v3 }
 0x313 LB: > { %s472_s24 = sld [smem:[#allocation10 + %s1126_s11]]  ;;  %s475_s14 = scalar_lea.vmem [#allocation5], %s1126_s11  ;;  %s1126_s11 = sphi %s1124_s11, %s471_s11  }
 0x314   : > { %s471_s11 = sadd.s32 1, %s1126_s11  }
 0x315   : > { %p468_p4 = scmp.ge.s32.totalorder %s471_s11, 32  }
 0x316   :  { %s1128_s9 = smov (%p468_p4), 0  }
 0x317   :  { %470 = sbr.rel (!%p468_p4) target bundleno = 787 (0x313), region = 214 }
 0x319   : > { %s473_s25 = scalar_lea.vmem [#allocation7], %s472_s24 }
 0x31a   : > { %v474_v4 = vld [vmem:[%s473_s25] sm:$0x1] }
 0x31b   : > { %476 = vst [vmem:[%s475_s14] sm:$0x1] %v474_v4 }
 0x31c LB: > { %s483_s28 = sld [smem:[#allocation13 + %s1130_s9]]  ;;  %s486_s27 = scalar_lea.vmem [#allocation8], %s1130_s9  ;;  %s1130_s9 = sphi %s1128_s9, %s482_s9  }
 0x31d   : > { %s482_s9 = sadd.s32 1, %s1130_s9  }
 0x31e   : > { %p479_p5 = scmp.ge.s32.totalorder %s482_s9, 32  }
 0x31f   :  { %v527_v6 = vld [vmem:[#allocation24 + $0x78] sm:$0xff] (%p479_p5)  ;;  %v526_v7 = vld [vmem:[#allocation24 + $0x70] sm:$0xff] (%p479_p5)  ;;  %v525_v8 = vld [vmem:[#allocation24 + $0x68] sm:$0xff] (%p479_p5)  ;;  %vm723_vm3 = vcmask (%p479_p5), 7168  }
 0x320   :  { %481 = sbr.rel (!%p479_p5) target bundleno = 796 (0x31c), region = 225  ;;  %528 = vmatpush.msra.mxu0 (%p479_p5), %v527_v6  ;;  %v524_v9 = vld [vmem:[#allocation24 + $0x60] sm:$0xff] (%p479_p5)  ;;  %v507_v10 = vld [vmem:[#allocation22 + $0x78] sm:$0xff] (%p479_p5)  ;;  %v506_v11 = vld [vmem:[#allocation22 + $0x70] sm:$0xff] (%p479_p5) }
 0x321   :  { %784 = vmatpush.msrb.mxu1 (%p479_p5), %v507_v10  ;;  %v523_v12 = vld [vmem:[#allocation24 + $0x58] sm:$0xff] (%p479_p5)  ;;  %v505_v13 = vld [vmem:[#allocation22 + $0x68] sm:$0xff] (%p479_p5)  ;;  %v522_v14 = vld [vmem:[#allocation24 + $0x50] sm:$0xff] (%p479_p5) }
 0x322   : > { %s484_s26 = scalar_lea.vmem [#allocation7], %s483_s28  ;;  %529 = vmatpush.msra.mxu0 (%p479_p5), %v526_v7  ;;  %v504_v15 = vld [vmem:[#allocation22 + $0x60] sm:$0xff] (%p479_p5)  ;;  %v521_v16 = vld [vmem:[#allocation24 + $0x48] sm:$0xff] (%p479_p5)  ;;  %v503_v17 = vld [vmem:[#allocation22 + $0x58] sm:$0xff] (%p479_p5) }
 0x323   : > { %v485_v5 = vld [vmem:[%s484_s26] sm:$0x1]  ;;  %785 = vmatpush.msrb.mxu1 (%p479_p5), %v506_v11  ;;  %v520_v18 = vld [vmem:[#allocation24 + $0x40] sm:$0xff] (%p479_p5)  ;;  %v502_v19 = vld [vmem:[#allocation22 + $0x50] sm:$0xff] (%p479_p5) }
 0x324   : > { %487 = vst [vmem:[%s486_s27] sm:$0x1] %v485_v5  ;;  %530 = vmatpush.msra.mxu0 (%p479_p5), %v525_v8  ;;  %v519_v20 = vld [vmem:[#allocation24 + $0x38] sm:$0xff] (%p479_p5)  ;;  %v501_v21 = vld [vmem:[#allocation22 + $0x48] sm:$0xff] (%p479_p5)  ;;  %v518_v22 = vld [vmem:[#allocation24 + $0x30] sm:$0xff] (%p479_p5) }
 0x325   :  { %786 = vmatpush.msrb.mxu1 %v505_v13  ;;  %v500_v23 = vld [vmem:[#allocation22 + $0x40] sm:$0xff]  ;;  %v517_v24 = vld [vmem:[#allocation24 + $0x28] sm:$0xff]  ;;  %v499_v25 = vld [vmem:[#allocation22 + $0x38] sm:$0xff] }
 0x326   :  { %531 = vmatpush.msra.mxu0 %v524_v9  ;;  %v516_v26 = vld [vmem:[#allocation24 + $0x20] sm:$0xff]  ;;  %v498_v27 = vld [vmem:[#allocation22 + $0x30] sm:$0xff]  ;;  %v515_v28 = vld [vmem:[#allocation24 + $0x18] sm:$0xff] }
 0x327   :  { %787 = vmatpush.msrb.mxu1 %v504_v15  ;;  %v497_v29 = vld [vmem:[#allocation22 + $0x28] sm:$0xff]  ;;  %v514_v30 = vld [vmem:[#allocation24 + $0x10] sm:$0xff]  ;;  %v496_v31 = vld [vmem:[#allocation22 + $0x20] sm:$0xff] }
 0x328   :  { %532 = vmatpush.msra.mxu0 %v523_v12  ;;  %v513_v32 = vld [vmem:[#allocation24 + $0x8] sm:$0xff]  ;;  %v495_v33 = vld [vmem:[#allocation22 + $0x18] sm:$0xff]  ;;  %v512_v34 = vld [vmem:[#allocation24] sm:$0xff] }
 0x329   :  { %788 = vmatpush.msrb.mxu1 %v503_v17  ;;  %v494_v35 = vld [vmem:[#allocation22 + $0x10] sm:$0xff]  ;;  %v493_v37 = vld [vmem:[#allocation22 + $0x8] sm:$0xff]  ;;  %v492_v38 = vld [vmem:[#allocation22] sm:$0xff] }
 0x32a   :  { %533 = vmatpush.msra.mxu0 %v522_v14  ;;  %v491_v39 = vld [vmem:[#allocation5 + $0x18] sm:$0xff]  ;;  %v488_v43 = vld [vmem:[#allocation5] sm:$0xff]  ;;  %v489_v44 = vld [vmem:[#allocation5 + $0x8] sm:$0xff] }
 0x32b   :  { %789 = vmatpush.msrb.mxu1 %v502_v19  ;;  %v508_v36 = vld [vmem:[#allocation8] sm:$0xff]  ;;  %v509_v40 = vld [vmem:[#allocation8 + $0x8] sm:$0xff]  ;;  %v510_v41 = vld [vmem:[#allocation8 + $0x10] sm:$0xff] }
 0x32c   :  { %534 = vmatpush.msra.mxu0 %v521_v16  ;;  %v511_v42 = vld [vmem:[#allocation8 + $0x18] sm:$0xff]  ;;  %v490_v45 = vld [vmem:[#allocation5 + $0x10] sm:$0xff]  ;;  %v611_v48 = vld [vmem:[%s1413_s13 + $0x68] sm:$0xff] }
 0x32d   :  { %790 = vmatpush.msrb.mxu1 %v501_v21  ;;  %v613_v46 = vld [vmem:[%s1413_s13 + $0x78] sm:$0xff]  ;;  %v612_v47 = vld [vmem:[%s1413_s13 + $0x70] sm:$0xff]  ;;  %v610_v49 = vld [vmem:[%s1413_s13 + $0x60] sm:$0xff] }
 0x32e   :  { %535 = vmatpush.msra.mxu0 %v520_v18  ;;  %618 = vmatpush.msrb.mxu2 %v613_v46  ;;  %v609_v50 = vld [vmem:[%s1413_s13 + $0x58] sm:$0xff]  ;;  %v608_v51 = vld [vmem:[%s1413_s13 + $0x50] sm:$0xff]  ;;  %v607_v52 = vld [vmem:[%s1413_s13 + $0x48] sm:$0xff] }
 0x32f   :  { %791 = vmatpush.msrb.mxu1 %v500_v23  ;;  %v606_v53 = vld [vmem:[%s1413_s13 + $0x40] sm:$0xff]  ;;  %v605_v54 = vld [vmem:[%s1413_s13 + $0x38] sm:$0xff]  ;;  %v604_v55 = vld [vmem:[%s1413_s13 + $0x30] sm:$0xff] }
 0x330   :  { %536 = vmatpush.msra.mxu0 %v519_v20  ;;  %619 = vmatpush.msrb.mxu2 %v612_v47  ;;  %v603_v56 = vld [vmem:[%s1413_s13 + $0x28] sm:$0xff]  ;;  %v602_v57 = vld [vmem:[%s1413_s13 + $0x20] sm:$0xff]  ;;  %v601_v58 = vld [vmem:[%s1413_s13 + $0x18] sm:$0xff] }
 0x331   :  { %792 = vmatpush.msrb.mxu1 %v499_v25  ;;  %v600_v60 = vld [vmem:[%s1413_s13 + $0x10] sm:$0xff]  ;;  %v599_v61 = vld [vmem:[%s1413_s13 + $0x8] sm:$0xff]  ;;  %v598_v62 = vld [vmem:[%s1413_s13] sm:$0xff] }
 0x332   :  { %537 = vmatpush.msra.mxu0 %v518_v22  ;;  %620 = vmatpush.msrb.mxu2 %v611_v48  ;;  %v862_v4 = vld [vmem:[%s1412_s12] ss:$0 sm:$0xff] }
 0x333   :  { %793 = vmatpush.msrb.mxu1 %v498_v27 }
 0x334   :  { %538 = vmatpush.msra.mxu0 %v517_v24  ;;  %621 = vmatpush.msrb.mxu2 %v610_v49 }
 0x335   :  { %794 = vmatpush.msrb.mxu1 %v497_v29 }
 0x336   :  { %539 = vmatpush.msra.mxu0 %v516_v26  ;;  %622 = vmatpush.msrb.mxu2 %v609_v50 }
 0x337   :  { %795 = vmatpush.msrb.mxu1 %v496_v31 }
 0x338   :  { %540 = vmatpush.msra.mxu0 %v515_v28  ;;  %623 = vmatpush.msrb.mxu2 %v608_v51 }
 0x339   :  { %796 = vmatpush.msrb.mxu1 %v495_v33 }
 0x33a   :  { %541 = vmatpush.msra.mxu0 %v514_v30  ;;  %624 = vmatpush.msrb.mxu2 %v607_v52 }
 0x33b   :  { %797 = vmatpush.msrb.mxu1 %v494_v35 }
 0x33c   :  { %542 = vmatpush.msra.mxu0 %v513_v32  ;;  %625 = vmatpush.msrb.mxu2 %v606_v53 }
 0x33d   :  { %798 = vmatpush.msrb.mxu1 %v493_v37 }
 0x33e   :  { %543 = vmatpush.msra.mxu0 %v512_v34  ;;  %626 = vmatpush.msrb.mxu2 %v605_v54 }
 0x33f   :  { %544 = vmatmul.f32.vlgmr.msra.gmra.mxu0 %v508_v36  ;;  %799 = vmatpush.msrb.mxu1 %v492_v38 }
 0x340   :  { %557 = vmatpush.msrb.mxu0 %v507_v10  ;;  %582 = vmatmul.f32.vlgmr.msrb.gmra.mxu1 %v491_v39 }
 0x341   :  { %627 = vmatpush.msrb.mxu2 %v604_v55 }
 0x342   :  { %558 = vmatpush.msrb.mxu0 %v506_v11 }
 0x343   :  { %628 = vmatpush.msrb.mxu2 %v603_v56 }
 0x344   :  { %559 = vmatpush.msrb.mxu0 %v505_v13 }
 0x345   :  { %629 = vmatpush.msrb.mxu2 %v602_v57 }
 0x346   :  { %560 = vmatpush.msrb.mxu0 %v504_v15 }
 0x347   :  { %547 = vmatmul.f32.gmra.mxu0 %v509_v40  ;;  %630 = vmatpush.msrb.mxu2 %v601_v58 }
 0x348   :  { %561 = vmatpush.msrb.mxu0 %v503_v17 }
 0x349   :  { %631 = vmatpush.msrb.mxu2 %v600_v60 }
 0x34a   :  { %562 = vmatpush.msrb.mxu0 %v502_v19  ;;  %v863_v19 = vld [vmem:[#allocation9] ss:$0 sm:$0xff] }
 0x34b   :  { %632 = vmatpush.msrb.mxu2 %v599_v61 }
 0x34c   :  { %563 = vmatpush.msrb.mxu0 %v501_v21 }
 0x34d   :  { %633 = vmatpush.msrb.mxu2 %v598_v62 }
 0x34e   :  { %564 = vmatpush.msrb.mxu0 %v500_v23 }
 0x34f   :  { %550 = vmatmul.f32.gmra.mxu0 %v510_v41 }
 0x350   :  { %565 = vmatpush.msrb.mxu0 %v499_v25 }
 0x352   :  { %566 = vmatpush.msrb.mxu0 %v498_v27 }
 0x354   :  { %567 = vmatpush.msrb.mxu0 %v497_v29 }
 0x356   :  { %568 = vmatpush.msrb.mxu0 %v496_v31 }
 0x357   :  { %553 = vmatmul.f32.gmra.mxu0 %v511_v42 }
 0x358   :  { %569 = vmatpush.msrb.mxu0 %v495_v33 }
 0x35a   :  { %570 = vmatpush.msrb.mxu0 %v494_v35 }
 0x35c   :  { %571 = vmatpush.msrb.mxu0 %v493_v37 }
 0x35e   :  { %572 = vmatpush.msrb.mxu0 %v492_v38 }
 0x35f   :  { %573 = vmatmul.f32.vlgmr.msrb.gmra.mxu0 %v488_v43 }
 0x367   :  { %576 = vmatmul.f32.gmra.mxu0 %v489_v44 }
 0x36f   :  { %579 = vmatmul.f32.gmra.mxu0 %v490_v45 }
 0x3bc   :  { %v545_v59 = vpop.f32.mrf.mxu0 }
 0x3bd   :  { %v583_v13 = vpop.f32.mrf.mxu1 }
 0x3c4   :  { %v548_v63 = vpop.f32.mrf.mxu0 }
 0x3cc   :  { %v551_v0 = vpop.f32.mrf.mxu0 }
 0x3d4   :  { %v554_v1 = vpop.f32.mrf.mxu0 }
 0x3d5   :  { %v584_v15 = vadd.f32 %v583_v13, %v554_v1 }
 0x3d7   :  { %v593_v17 = vadd.f32 %v862_v4, %v584_v15 }
 0x3d9   :  { %v597_v18 = vmax.f32 %v593_v17, 0.0 }
 0x3dc   :  { %v574_v2 = vpop.f32.mrf.mxu0 }
 0x3dd   :  { %v575_v3 = vadd.f32 %v574_v2, %v545_v59 }
 0x3df   :  { %v590_v5 = vadd.f32 %v862_v4, %v575_v3 }
 0x3e1   :  { %v594_v6 = vmax.f32 %v590_v5, 0.0 }
 0x3e3   :  { %634 = vmatmul.f32.vlgmr.msrb.gmra.mxu2 %v594_v6 }
 0x3e4   :  { %v577_v7 = vpop.f32.mrf.mxu0 }
 0x3e5   :  { %v578_v8 = vadd.f32 %v577_v7, %v548_v63 }
 0x3e7   :  { %v591_v9 = vadd.f32 %v862_v4, %v578_v8 }
 0x3e9   :  { %v595_v10 = vmax.f32 %v591_v9, 0.0 }
 0x3eb   :  { %637 = vmatmul.f32.gmra.mxu2 %v595_v10 }
 0x3ec   :  { %v580_v11 = vpop.f32.mrf.mxu0 }
 0x3ed   :  { %v581_v12 = vadd.f32 %v580_v11, %v551_v0 }
 0x3ef   :  { %v592_v14 = vadd.f32 %v862_v4, %v581_v12 }
 0x3f1   :  { %v596_v16 = vmax.f32 %v592_v14, 0.0 }
 0x3f3   :  { %640 = vmatmul.f32.gmra.mxu2 %v596_v16 }
 0x3fb   :  { %643 = vmatmul.f32.gmra.mxu2 %v597_v18 }
 0x466   :  { %v635_v20 = vpop.f32.mrf.mxu2 }
 0x467   :  { %v636_v21 = vadd.f32 %v863_v19, %v635_v20 }
 0x469   :  { %v780_v22 = vmul.f32 -1.442695, %v636_v21 }
 0x46b   :  { %864 = vpow2.f32 %v780_v22 }
 0x46e   :  { %v638_v23 = vpop.f32.mrf.mxu2 }
 0x46f   :  { %v639_v24 = vadd.f32 %v863_v19, %v638_v23 }
 0x471   :  { %v865_v25 = vpop.eup %864  ;;  %v781_v26 = vmul.f32 -1.442695, %v639_v24 }
 0x472   :  { %v659_v27 = vadd.f32 1.0, %v865_v25 }
 0x473   :  { %866 = vpow2.f32 %v781_v26 }
 0x474   :  { %868 = vrcp.f32 %v659_v27  ;;  %v674_v36 = vand.u32 2147483648, %v659_v27  ;;  %v672_v39 = vand.u32 2147483647, %v659_v27  ;;  %vm668_vm1 = vweird.f32 %v659_v27 }
 0x476   :  { %v641_v28 = vpop.f32.mrf.mxu2  ;;  %v675_v45 = vor.u32 1.1754944e-38, %v674_v36  ;;  %vm673_vm4 = vcmp.eq.f32.partialorder %v672_v39, 8.507059e+37 }
 0x477   :  { %v642_v29 = vadd.f32 %v863_v19, %v641_v28 }
 0x479   :  { %v867_v30 = vpop.eup %866  ;;  %v782_v31 = vmul.f32 -1.442695, %v642_v29 }
 0x47a   :  { %v869_v32 = vpop.eup %868  ;;  %v660_v33 = vadd.f32 1.0, %v867_v30 }
 0x47b   :  { %v664_v34 = vmul.f32 %v869_v32, %v659_v27  ;;  %870 = vpow2.f32 %v782_v31  ;;  %vm669_vm0 = vweird.f32 %v869_v32 }
 0x47c   :  { %872 = vrcp.f32 %v660_v33  ;;  %vm670_vm2 = vmor %vm668_vm1, %vm669_vm0  ;;  %v689_v51 = vand.u32 2147483648, %v660_v33  ;;  %v687_v53 = vand.u32 2147483647, %v660_v33  ;;  %vm683_vm6 = vweird.f32 %v660_v33 }
 0x47d   :  { %v665_v35 = vsub.f32 1.0, %v664_v34 }
 0x47e   :  { %v644_v37 = vpop.f32.mrf.mxu2  ;;  %v690_v57 = vor.u32 1.1754944e-38, %v689_v51  ;;  %vm688_vm8 = vcmp.eq.f32.partialorder %v687_v53, 8.507059e+37 }
 0x47f   :  { %v666_v38 = vmul.f32 %v869_v32, %v665_v35  ;;  %v645_v40 = vadd.f32 %v863_v19, %v644_v37 }
 0x481   :  { %v871_v41 = vpop.eup %870  ;;  %v667_v42 = vadd.f32 %v869_v32, %v666_v38  ;;  %v783_v43 = vmul.f32 -1.442695, %v645_v40 }
 0x482   :  { %v873_v44 = vpop.eup %872  ;;  %v661_v46 = vadd.f32 1.0, %v871_v41 }
 0x483   :  { %v671_v47 = vsel %vm670_vm2, %v869_v32, %v667_v42  ;;  %v679_v48 = vmul.f32 %v873_v44, %v660_v33  ;;  %874 = vpow2.f32 %v783_v43  ;;  %vm684_vm5 = vweird.f32 %v873_v44 }
 0x484   :  { %v676_v49 = vsel %vm673_vm4, %v675_v45, %v671_v47  ;;  %876 = vrcp.f32 %v661_v46  ;;  %vm685_vm7 = vmor %vm683_vm6, %vm684_vm5  ;;  %v704_v63 = vand.u32 2147483648, %v661_v46  ;;  %v702_v1 = vand.u32 2147483647, %v661_v46 }
 0x485   :  { %724 = vst.msk [vmem:[%s1415_s15] sm:$0xff] %vm723_vm3, %v676_v49  ;;  %v680_v50 = vsub.f32 1.0, %v679_v48  ;;  %vm698_vm10 = vweird.f32 %v661_v46 }
 0x486   :  { %v705_v4 = vor.u32 1.1754944e-38, %v704_v63  ;;  %vm703_vm12 = vcmp.eq.f32.partialorder %v702_v1, 8.507059e+37 }
 0x487   :  { %v681_v52 = vmul.f32 %v873_v44, %v680_v50 }
 0x489   :  { %v875_v54 = vpop.eup %874  ;;  %v682_v55 = vadd.f32 %v873_v44, %v681_v52 }
 0x48a   :  { %v877_v56 = vpop.eup %876  ;;  %v662_v58 = vadd.f32 1.0, %v875_v54 }
 0x48b   :  { %v686_v59 = vsel %vm685_vm7, %v873_v44, %v682_v55  ;;  %v694_v60 = vmul.f32 %v877_v56, %v661_v46  ;;  %vm699_vm9 = vweird.f32 %v877_v56 }
 0x48c   :  { %v691_v61 = vsel %vm688_vm8, %v690_v57, %v686_v59  ;;  %878 = vrcp.f32 %v662_v58  ;;  %vm700_vm11 = vmor %vm698_vm10, %vm699_vm9  ;;  %v719_v9 = vand.u32 2147483648, %v662_v58  ;;  %v717_v11 = vand.u32 2147483647, %v662_v58 }
 0x48d   :  { %725 = vst.msk [vmem:[%s1415_s15 + $0x8] sm:$0xff] %vm723_vm3, %v691_v61  ;;  %v695_v62 = vsub.f32 1.0, %v694_v60  ;;  %vm713_vm14 = vweird.f32 %v662_v58 }
 0x48e   :  { %v720_v13 = vor.u32 1.1754944e-38, %v719_v9  ;;  %vm718_vm0 = vcmp.eq.f32.partialorder %v717_v11, 8.507059e+37 }
 0x48f   :  { %v696_v0 = vmul.f32 %v877_v56, %v695_v62 }
 0x491   :  { %v697_v2 = vadd.f32 %v877_v56, %v696_v0 }
 0x492   :  { %v879_v3 = vpop.eup %878 }
 0x493   :  { %v701_v5 = vsel %vm700_vm11, %v877_v56, %v697_v2  ;;  %v709_v6 = vmul.f32 %v879_v3, %v662_v58  ;;  %vm714_vm13 = vweird.f32 %v879_v3 }
 0x494   :  { %v706_v7 = vsel %vm703_vm12, %v705_v4, %v701_v5  ;;  %vm715_vm15 = vmor %vm713_vm14, %vm714_vm13 }
 0x495   :  { %726 = vst.msk [vmem:[%s1415_s15 + $0x10] sm:$0xff] %vm723_vm3, %v706_v7  ;;  %v710_v8 = vsub.f32 1.0, %v709_v6 }
 0x497   :  { %v711_v10 = vmul.f32 %v879_v3, %v710_v8 }
 0x499   :  { %v712_v12 = vadd.f32 %v879_v3, %v711_v10 }
 0x49b   :  { %v716_v14 = vsel %vm715_vm15, %v879_v3, %v712_v12 }
 0x49c   :  { %v721_v15 = vsel %vm718_vm0, %v720_v13, %v716_v14 }
 0x49d   :  { %727 = vst.msk [vmem:[%s1415_s15 + $0x18] sm:$0xff] %vm723_vm3, %v721_v15 }
 0x49e   :  { %732 = vsyncpa [#allocation11], 1 }
 0x49f   :  { %733 = vsyncpa [#allocation17], 1 }
 0x4a0   :  { %734 = vsyncpa [#allocation20], 1 }
 0x4a1   :  { %735 = vsyncpa [#allocation23], 1 }
 0x4a2   :  { %736 = vsyncpa [#allocation12], 1 }
 0x4a3   :  { %737 = vsyncpa [#allocation14], 1 }

</bundles_post_ra>
